<compile_context>
chip_gen: v5e
topology: v5e:2x2
jax: 0.10.0
libtpu: 0.0.40
codegen_flags: <defaults>
</compile_context>

<pallas_src>
import jax
import jax.numpy as jnp
from jax.experimental import pallas as pl
from jax.experimental.pallas import tpu as pltpu


def _softmax_kernel(x_ref, o_ref):
    # x_ref, o_ref: (block_n, L) tiles in VMEM; softmax along the last (lane) axis.
    # Compute in f32: numerically stable and required on v5e (no bf16 VPU/EUP).
    # The kernel is HBM-bandwidth-bound, so the upcast costs only VMEM
    # temporaries, which the tile budget in the wrapper accounts for.
    x = x_ref[...].astype(jnp.float32)
    m = jnp.max(x, axis=-1, keepdims=True)
    e = jnp.exp(x - m)
    s = jnp.sum(e, axis=-1, keepdims=True)
    # approx=True lowers to the otherwise-idle EUP reciprocal slot.
    o_ref[...] = (e * pl.reciprocal(s, approx=True)).astype(o_ref.dtype)


def _round_up(x, m):
    return ((x + m - 1) // m) * m


def _sublane_multiple(itemsize):
    # f32 -> 8, bf16/f16 -> 16, int8/fp8 -> 32 (sub-32-bit dtypes pack sublanes).
    return max(8, (8 * 4) // max(int(itemsize), 1))


def _pick_block_n(N, L, itemsize):
    """Row-tile size: one (block_n, L) f32 tile ~2 MiB, multiple of the sublane
    tile, capped at N.  Keeps double-buffered in/out + f32 temporaries well
    under the scoped-VMEM defaults of every TPU generation while amortizing the
    ~0.35 us per-grid-step overhead."""
    sub = _sublane_multiple(itemsize)
    target_bytes = 2 * 1024 * 1024
    bn = max(target_bytes // (L * 4), sub)
    bn = _round_up(min(bn, N), sub)
    return N if bn >= N else bn


def softmax_classifier(x, *, block_n=None):
    """Row-wise softmax of a 2-D array x of shape (N, L)."""
    assert x.ndim == 2, "Softmax requires a 2D tensor as input"
    N, L = x.shape
    itemsize = jnp.dtype(x.dtype).itemsize
    sub = _sublane_multiple(itemsize)

    if block_n is None:
        block_n = _pick_block_n(N, L, itemsize)
    else:
        # Validate user block_n: cap at N; if a partial tile of rows, it must be
        # a multiple of the sublane tile to lower cleanly.
        block_n = min(int(block_n), N)
        if block_n < N:
            block_n = _round_up(block_n, sub)
            block_n = min(block_n, N) if block_n >= N else block_n

    grid = (pl.cdiv(N, block_n),)

    # VMEM budget: 2 pipeline buffers each for in/out + ~4 f32-sized temporaries
    # (upcast / exp / scratch).  Floor at 32 MiB (within physical VMEM on all
    # generations), cap at 48 MiB to stay inside v7x's 64 MiB.
    tile_elems = block_n * L
    est_vmem = 4 * tile_elems * itemsize + 4 * tile_elems * 4
    vmem_limit = int(min(max(2 * est_vmem, 32 * 1024 * 1024), 48 * 1024 * 1024))

    cost = pl.CostEstimate(
        flops=5 * N * L,                         # sub, exp-arg, mul + row reduces
        transcendentals=N * L,                   # exp
        bytes_accessed=2 * N * L * itemsize,     # read x + write out
    )

    # TODO(synk): for L < 128 with large N, a lane-dense (row-packed / transposed)
    # output layout avoids masked vst.msk partial stores; for vocab-scale L add a
    # second "arbitrary" grid axis over L with an online-softmax accumulator.
    return pl.pallas_call(
        _softmax_kernel,
        out_shape=jax.ShapeDtypeStruct((N, L), x.dtype),
        grid_spec=pltpu.PrefetchScalarGridSpec(
            num_scalar_prefetch=0,
            grid=grid,
            in_specs=[pl.BlockSpec((block_n, L), lambda i: (i, 0))],
            out_specs=pl.BlockSpec((block_n, L), lambda i: (i, 0)),
        ),
        compiler_params=pltpu.CompilerParams(
            dimension_semantics=("parallel",),
            vmem_limit_bytes=vmem_limit,
        ),
        cost_estimate=cost,
    )(x)


if __name__ == "__main__":
    key = jax.random.PRNGKey(0)
    k1, k2 = jax.random.split(key)

    # Input (N, L) consistent with the module's forward: batch=2, L=8 classes.
    N, L = 2, 8
    x = jax.random.normal(k1, (N, L), dtype=jnp.float32)
    out = jax.block_until_ready(softmax_classifier(x))

    ref = jax.nn.softmax(x, axis=-1)
    assert out.shape == (N, L)
    # Tolerance loosened to cover the approx (EUP vrcp) reciprocal.
    assert jnp.allclose(out, ref, atol=2e-3, rtol=2e-3)
    assert jnp.allclose(jnp.sum(out, axis=-1), jnp.ones((N,)), atol=2e-3)

    # Exercise the tiled path: multi-step grid + partial (masked) last row tile.
    N2, L2 = 50, 160
    x2 = jax.random.normal(k2, (N2, L2), dtype=jnp.float32) * 4.0
    out2 = jax.block_until_ready(softmax_classifier(x2, block_n=16))
    ref2 = jax.nn.softmax(x2, axis=-1)
    assert out2.shape == (N2, L2)
    assert jnp.allclose(out2, ref2, atol=2e-3, rtol=2e-3)

    print("KERNEL_OK")
</pallas_src>

<mosaic_0001>
module attributes {stable_mosaic.version = 11 : i64} {
  func.func @_softmax_kernel(%arg0: i32, %arg1: memref<2x8xf32, #tpu.memory_space<vmem>>, %arg2: memref<2x8xf32, #tpu.memory_space<vmem>>) attributes {dimension_semantics = [#tpu.dimension_semantics<parallel>], iteration_bounds = array<i64: 1>, scalar_prefetch = 0 : i64, scratch_operands = 0 : i64, tpu.core_type = #tpu.core_type<tc>, window_params = [{transform_indices = @transform_0, window_bounds = array<i64: 2, 8>}, {transform_indices = @transform_1, window_bounds = array<i64: 2, 8>}]} {
    %c0 = arith.constant 0 : index
    %c0_0 = arith.constant 0 : index
    %0 = vector.load %arg1[%c0, %c0_0] : memref<2x8xf32, #tpu.memory_space<vmem>>, vector<2x8xf32>
    %cst = arith.constant dense<0xFF800000> : vector<2xf32>
    %1 = vector.multi_reduction <maximumf>, %0, %cst [1] : vector<2x8xf32> to vector<2xf32>
    %2 = vector.shape_cast %1 : vector<2xf32> to vector<2x1xf32>
    %3 = vector.broadcast %2 : vector<2x1xf32> to vector<2x8xf32>
    %4 = arith.subf %0, %3 : vector<2x8xf32>
    %5 = math.exp %4 : vector<2x8xf32>
    %cst_1 = arith.constant dense<0.000000e+00> : vector<2xf32>
    %6 = vector.multi_reduction <add>, %5, %cst_1 [1] : vector<2x8xf32> to vector<2xf32>
    %7 = vector.shape_cast %6 : vector<2xf32> to vector<2x1xf32>
    %8 = tpu.reciprocal %7 {approx = true} : vector<2x1xf32> -> vector<2x1xf32>
    %9 = vector.broadcast %8 : vector<2x1xf32> to vector<2x8xf32>
    %10 = arith.mulf %5, %9 : vector<2x8xf32>
    %c0_2 = arith.constant 0 : index
    %c0_3 = arith.constant 0 : index
    %11 = vector.load %arg2[%c0_2, %c0_3] : memref<2x8xf32, #tpu.memory_space<vmem>>, vector<2x8xf32>
    tpu.vector_store %arg2[%c0_2, %c0_3], %10 {strides = array<i32>} : memref<2x8xf32, #tpu.memory_space<vmem>>, vector<2x8xf32>,
    return
  }
  func.func @transform_0(%arg0: i32) -> (i32, i32) {
    %c0_i32 = arith.constant 0 : i32
    %c0_i32_0 = arith.constant 0 : i32
    return %arg0, %c0_i32 : i32, i32
  }
  func.func @transform_1(%arg0: i32) -> (i32, i32) {
    %c0_i32 = arith.constant 0 : i32
    %c0_i32_0 = arith.constant 0 : i32
    return %arg0, %c0_i32 : i32, i32
  }
}

</mosaic_0001>

<bundles_post_ra>
// kernel: tpu_custom_call.1
= control target key start
LH: loop header
LB: loop body
LE: loop exit
PB: predicated region body
PF: predicated region fallthrough
CT: control target
= control target key end

     0   :  { %6 = vsyncpa [#allocation3], 0  ;;  %s133_s0 = inlined_call_operand.hbm [shape: f32[2,8], index: 0, kind: input, shape index: {}]   ;;  %s134_s1 = inlined_call_operand.hbm [shape: f32[2,8], index: 1, kind: output, shape index: {}]  }
   0x1   :  { %7 = vsyncpa [#allocation4], 0  ;;  %s13_s8 = sshll.u32 %s133_s0, 4  ;;  %s112_s9 = smov [#allocation2]   ;;  %s14_s8 = int_to_ptr.hbm [resolvable:$true] %s13_s8 }
   0x2   :  { %s15_s10 = sshll.u32 %s112_s9, 4  ;;  %s16_s10 = int_to_ptr.vmem [resolvable:$true] %s15_s10 }
   0x3   :  { %18 = dma.hbm_to_vmem [thread:$0]  %s14_s8, 32, %s16_s10, [#allocation3]  }
   0x4   :  { %108 = dma.done.wait [#allocation3], 32  }
   0x5   :  { %109 = vsyncadd [#allocation3], 4294967264  ;;  %vm24_vm0 = vcmask 58368   ;;  %v23_v0 = vld [vmem:[#allocation2] sm:$0x3]  ;;  %s113_s0 = smov [#allocation5]  }
   0x6   :  { %v25_v1 = vsel %vm24_vm0, %v23_v0, -inf  ;;  %s42_s11 = sshll.u32 %s113_s0, 4  ;;  %s44_s14 = sshll.u32 %s134_s1, 4  ;;  %s43_s11 = int_to_ptr.vmem [resolvable:$true] %s42_s11  ;;  %s45_s14 = int_to_ptr.hbm [resolvable:$true] %s44_s14 }
   0x7   :  { %26 = vmax.xlane.f32.xlu0 %v25_v1 }
  0x7a   :  { %v27_v2 = vpop.xlane.xlu0 %26 }
  0x7b   :  { %v28_v3 = vsub.f32 %v23_v0, %v27_v2 }
  0x7d   :  { %v29_v4 = vmul.f32 1.442695, %v28_v3 }
  0x7f   :  { %56 = vpow2.f32 %v29_v4 }
  0x85   :  { %v57_v5 = vpop.eup %56 }
  0x86   :  { %v31_v6 = vsel %vm24_vm0, %v57_v5, 0.0 }
  0x87   :  { %32 = vadd.xlane.f32.xlu0 %v31_v6 }
  0xfa   :  { %v33_v7 = vpop.xlane.xlu0 %32 }
  0xfb   :  { %58 = vrcp.f32 %v33_v7 }
 0x101   :  { %v59_v8 = vpop.eup %58 }
 0x102   :  { %v35_v9 = vmul.f32 %v59_v8, %v57_v5 }
 0x104   :  { %36 = vst.msk [vmem:[#allocation5] sm:$0x3] %vm24_vm0, %v35_v9 }
 0x105   :  { %47 = dma.vmem_to_hbm [thread:$0]  %s43_s11, 32, %s45_s14, [#allocation4]  }
 0x106   :  { %110 = dma.done.wait [#allocation4], 32  }
 0x107   :  { %111 = vsyncadd [#allocation4], 4294967264 }
 0x108   :  { %52 = vsyncpa [#allocation3], 1 }
 0x109   :  { %53 = vsyncpa [#allocation4], 1 }

</bundles_post_ra>
